<compile_context>
chip_gen: v7x
topology: tpu7x:2x2x1
jax: 0.10.0
libtpu: 0.0.40
codegen_flags: <defaults>
</compile_context>

<pallas_src>
import math
import functools

import jax
import jax.numpy as jnp
from jax.experimental import pallas as pl
from jax.experimental.pallas import tpu as pltpu


PARAM_ORDER = ["wq", "bq", "wk", "bk", "wv", "bv", "wp", "bp",
               "ln1g", "ln1b", "w1", "b1", "w2", "b2", "ln2g", "ln2b"]
MATMUL_WEIGHTS = ("wq", "wk", "wv", "wp", "w1", "w2")


def _layernorm(y, g, b, eps=1e-5):
    # PyTorch nn.LayerNorm: biased variance over last dim, f32 math.
    mu = jnp.mean(y, axis=-1, keepdims=True)
    var = jnp.mean((y - mu) ** 2, axis=-1, keepdims=True)
    return (y - mu) * jax.lax.rsqrt(var + eps) * g + b


def _gelu_exact(x):
    # nn.GELU() default = exact erf formulation.
    return 0.5 * x * (1.0 + jax.lax.erf(x * (1.0 / math.sqrt(2.0))))


def block_kernel(x_ref,
                 wq_ref, bq_ref, wk_ref, bk_ref, wv_ref, bv_ref,
                 wp_ref, bp_ref,
                 ln1g_ref, ln1b_ref,
                 w1_ref, b1_ref, w2_ref, b2_ref,
                 ln2g_ref, ln2b_ref,
                 out_ref, *, n_heads):
    b_blk, T, C = x_ref.shape
    D = C // n_heads
    R = b_blk * T
    scale = 1.0 / math.sqrt(D)

    # ---- fold batch into the matmul M dimension ---------------------------
    x_rows = x_ref[...].reshape(R, C)
    x_res = x_rows.astype(jnp.float32)          # residual / LN path (f32)
    x_bf = x_rows.astype(jnp.bfloat16)          # MXU operand path (bf16)

    def dense(act_bf16, w_ref, b_ref):
        # bf16 MXU operands, f32 accumulation, f32 bias add.
        return (jnp.dot(act_bf16, w_ref[...],
                        preferred_element_type=jnp.float32) + b_ref[...])

    # ---- MaskedCausalAttention --------------------------------------------
    q = dense(x_bf, wq_ref, bq_ref)             # (R, C) f32
    k = dense(x_bf, wk_ref, bk_ref)
    v = dense(x_bf, wv_ref, bv_ref)

    def split_heads(a):
        # (R, C) -> (b_blk * n_heads, T, D): batch-separated, head-major.
        parts = [a[b * T:(b + 1) * T, h * D:(h + 1) * D]
                 for b in range(b_blk) for h in range(n_heads)]
        return jnp.stack(parts, axis=0)

    qh = split_heads(q).astype(jnp.bfloat16)    # (G, T, D)
    kh = split_heads(k).astype(jnp.bfloat16)
    vh = split_heads(v).astype(jnp.bfloat16)

    rows = jax.lax.broadcasted_iota(jnp.int32, (T, T), 0)
    cols = jax.lax.broadcasted_iota(jnp.int32, (T, T), 1)
    causal = (cols <= rows)[None, :, :]         # lower-triangular, (1, T, T)

    # scores for all (batch, head) pairs in one batched MXU op
    s = jnp.einsum('gqd,gkd->gqk', qh, kh,
                   preferred_element_type=jnp.float32) * scale
    s = jnp.where(causal, s, -jnp.inf)

    # hand-rolled softmax: max-subtract, exp (EUP), approx reciprocal (EUP)
    m = jnp.max(s, axis=-1, keepdims=True)
    e = jnp.exp(s - m)
    denom = jnp.sum(e, axis=-1, keepdims=True)
    p = e * pl.reciprocal(denom, approx=True)

    att3 = jnp.einsum('gqk,gkd->gqd', p.astype(jnp.bfloat16), vh,
                      preferred_element_type=jnp.float32)    # (G, T, D)

    # merge heads (lane concat) and batch (row concat) back to (R, C)
    per_batch = [jnp.concatenate([att3[b * n_heads + h] for h in range(n_heads)],
                                 axis=-1) for b in range(b_blk)]
    att = per_batch[0] if b_blk == 1 else jnp.concatenate(per_batch, axis=0)

    att = dense(att.astype(jnp.bfloat16), wp_ref, bp_ref)
    # att_drop / proj_drop: identity in eval mode.

    # ---- residual + ln1 ----------------------------------------------------
    x1 = _layernorm(x_res + att, ln1g_ref[...], ln1b_ref[...])

    # ---- MLP: Linear(C,4C) -> GELU -> Linear(4C,C) -------------------------
    h1 = dense(x1.astype(jnp.bfloat16), w1_ref, b1_ref)
    h1 = _gelu_exact(h1)
    h2 = dense(h1.astype(jnp.bfloat16), w2_ref, b2_ref)
    # mlp Dropout: identity in eval mode.

    # ---- residual + ln2 ----------------------------------------------------
    y = _layernorm(x1 + h2, ln2g_ref[...], ln2b_ref[...])

    out_ref[...] = y.reshape(b_blk, T, C).astype(out_ref.dtype)


def _pick_batch_block(B, T, target_rows=256):
    """Largest batch block so b_blk*T <= target_rows, keeping >=2 grid steps
    (both v7x TensorCores busy) whenever the batch allows it."""
    if T % 8 != 0:
        return 1
    divisors = [d for d in range(1, B + 1) if B % d == 0]
    fitting = [d for d in divisors if d * T <= target_rows] or [1]
    two_step = [d for d in fitting if B // d >= 2]
    return max(two_step) if two_step else max(fitting)


def block_forward(x, params, n_heads):
    B, T, C = x.shape
    assert C % n_heads == 0

    b_blk = _pick_batch_block(B, T)
    grid = (B // b_blk,)

    # bf16 weights for the MXU (halves weight VMEM); biases / LN params f32.
    weights = []
    for name in PARAM_ORDER:
        w = params[name]
        w = w.astype(jnp.bfloat16) if name in MATMUL_WEIGHTS else w.astype(jnp.float32)
        weights.append(w)

    def const_spec(arr):
        nd = arr.ndim
        return pl.BlockSpec(arr.shape, lambda i, _nd=nd: (0,) * _nd)

    in_specs = [pl.BlockSpec((b_blk, T, C), lambda i: (i, 0, 0))] + \
               [const_spec(w) for w in weights]
    out_specs = pl.BlockSpec((b_blk, T, C), lambda i: (i, 0, 0))

    # VMEM budget from the actual footprint (Pallas double-buffers blocks).
    # TODO(synk): for C >~ 768 on v7x (64 MiB VMEM), stream/tile w1,w2 instead
    # of keeping them whole, and single-buffer constant-index weight specs.
    weight_bytes = sum(w.size * w.dtype.itemsize for w in weights)
    block_bytes = b_blk * T * C * 4
    act_bytes = b_blk * T * (4 * C) * 4 * 6          # q/k/v/att/scores/MLP hidden, f32
    vmem_limit = int(min(64 * 2**20,
                         max(32 * 2**20,
                             3 * weight_bytes + 8 * block_bytes + act_bytes)))

    kernel = functools.partial(block_kernel, n_heads=n_heads)
    return pl.pallas_call(
        kernel,
        out_shape=jax.ShapeDtypeStruct((B, T, C), x.dtype),
        grid=grid,
        in_specs=in_specs,
        out_specs=out_specs,
        compiler_params=pltpu.CompilerParams(
            dimension_semantics=("parallel",),
            vmem_limit_bytes=vmem_limit),
    )(x, *weights)


def init_params(key, h_dim):
    """Deterministic init matching nn.Linear / nn.LayerNorm defaults."""
    keys = jax.random.split(key, 12)

    def linear(kw, kb, fan_in, fan_out):
        bound = 1.0 / math.sqrt(fan_in)
        # stored as (in, out) so kernel does x @ W
        w = jax.random.uniform(kw, (fan_in, fan_out), jnp.float32, -bound, bound)
        b = jax.random.uniform(kb, (1, fan_out), jnp.float32, -bound, bound)
        return w, b

    p = {}
    p["wq"], p["bq"] = linear(keys[0], keys[1], h_dim, h_dim)
    p["wk"], p["bk"] = linear(keys[2], keys[3], h_dim, h_dim)
    p["wv"], p["bv"] = linear(keys[4], keys[5], h_dim, h_dim)
    p["wp"], p["bp"] = linear(keys[6], keys[7], h_dim, h_dim)
    p["w1"], p["b1"] = linear(keys[8], keys[9], h_dim, 4 * h_dim)
    p["w2"], p["b2"] = linear(keys[10], keys[11], 4 * h_dim, h_dim)
    p["ln1g"] = jnp.ones((1, h_dim), jnp.float32)
    p["ln1b"] = jnp.zeros((1, h_dim), jnp.float32)
    p["ln2g"] = jnp.ones((1, h_dim), jnp.float32)
    p["ln2b"] = jnp.zeros((1, h_dim), jnp.float32)
    return p


if __name__ == "__main__":
    B, T, C, n_heads = 2, 8, 32, 4       # max_T == T == 8, h_dim == 32
    root = jax.random.PRNGKey(0)
    kx, kp = jax.random.split(root)

    x = jax.random.normal(kx, (B, T, C), dtype=jnp.float32)
    params = init_params(kp, C)

    out = block_forward(x, params, n_heads)
    jax.block_until_ready(out)
    assert out.shape == (B, T, C)
    assert bool(jnp.all(jnp.isfinite(out)))
    print("KERNEL_OK")
</pallas_src>

<mosaic_0001>
module attributes {stable_mosaic.version = 11 : i64} {
  func.func @block_kernel(%arg0: i32, %arg1: memref<1x8x32xf32, #tpu.memory_space<vmem>>, %arg2: memref<32x32xbf16, #tpu.memory_space<vmem>>, %arg3: memref<1x32xf32, #tpu.memory_space<vmem>>, %arg4: memref<32x32xbf16, #tpu.memory_space<vmem>>, %arg5: memref<1x32xf32, #tpu.memory_space<vmem>>, %arg6: memref<32x32xbf16, #tpu.memory_space<vmem>>, %arg7: memref<1x32xf32, #tpu.memory_space<vmem>>, %arg8: memref<32x32xbf16, #tpu.memory_space<vmem>>, %arg9: memref<1x32xf32, #tpu.memory_space<vmem>>, %arg10: memref<1x32xf32, #tpu.memory_space<vmem>>, %arg11: memref<1x32xf32, #tpu.memory_space<vmem>>, %arg12: memref<32x128xbf16, #tpu.memory_space<vmem>>, %arg13: memref<1x128xf32, #tpu.memory_space<vmem>>, %arg14: memref<128x32xbf16, #tpu.memory_space<vmem>>, %arg15: memref<1x32xf32, #tpu.memory_space<vmem>>, %arg16: memref<1x32xf32, #tpu.memory_space<vmem>>, %arg17: memref<1x32xf32, #tpu.memory_space<vmem>>, %arg18: memref<1x8x32xf32, #tpu.memory_space<vmem>>) attributes {dimension_semantics = [#tpu.dimension_semantics<parallel>], iteration_bounds = array<i64: 2>, scalar_prefetch = 0 : i64, scratch_operands = 0 : i64, tpu.core_type = #tpu.core_type<tc>, window_params = [{transform_indices = @transform_0, window_bounds = array<i64: 1, 8, 32>}, {pipeline_mode = #tpu.pipeline_mode<synchronous>, transform_indices = @transform_1, window_bounds = array<i64: 32, 32>}, {pipeline_mode = #tpu.pipeline_mode<synchronous>, transform_indices = @transform_2, window_bounds = array<i64: 1, 32>}, {pipeline_mode = #tpu.pipeline_mode<synchronous>, transform_indices = @transform_3, window_bounds = array<i64: 32, 32>}, {pipeline_mode = #tpu.pipeline_mode<synchronous>, transform_indices = @transform_4, window_bounds = array<i64: 1, 32>}, {pipeline_mode = #tpu.pipeline_mode<synchronous>, transform_indices = @transform_5, window_bounds = array<i64: 32, 32>}, {pipeline_mode = #tpu.pipeline_mode<synchronous>, transform_indices = @transform_6, window_bounds = array<i64: 1, 32>}, {pipeline_mode = #tpu.pipeline_mode<synchronous>, transform_indices = @transform_7, window_bounds = array<i64: 32, 32>}, {pipeline_mode = #tpu.pipeline_mode<synchronous>, transform_indices = @transform_8, window_bounds = array<i64: 1, 32>}, {pipeline_mode = #tpu.pipeline_mode<synchronous>, transform_indices = @transform_9, window_bounds = array<i64: 1, 32>}, {pipeline_mode = #tpu.pipeline_mode<synchronous>, transform_indices = @transform_10, window_bounds = array<i64: 1, 32>}, {pipeline_mode = #tpu.pipeline_mode<synchronous>, transform_indices = @transform_11, window_bounds = array<i64: 32, 128>}, {pipeline_mode = #tpu.pipeline_mode<synchronous>, transform_indices = @transform_12, window_bounds = array<i64: 1, 128>}, {pipeline_mode = #tpu.pipeline_mode<synchronous>, transform_indices = @transform_13, window_bounds = array<i64: 128, 32>}, {pipeline_mode = #tpu.pipeline_mode<synchronous>, transform_indices = @transform_14, window_bounds = array<i64: 1, 32>}, {pipeline_mode = #tpu.pipeline_mode<synchronous>, transform_indices = @transform_15, window_bounds = array<i64: 1, 32>}, {pipeline_mode = #tpu.pipeline_mode<synchronous>, transform_indices = @transform_16, window_bounds = array<i64: 1, 32>}, {transform_indices = @transform_17, window_bounds = array<i64: 1, 8, 32>}]} {
    %c0 = arith.constant 0 : index
    %c0_0 = arith.constant 0 : index
    %c0_1 = arith.constant 0 : index
    %0 = vector.load %arg1[%c0, %c0_0, %c0_1] : memref<1x8x32xf32, #tpu.memory_space<vmem>>, vector<1x8x32xf32>
    %1 = vector.shape_cast %0 : vector<1x8x32xf32> to vector<8x32xf32>
    %2 = arith.truncf %1 : vector<8x32xf32> to vector<8x32xbf16>
    %c0_2 = arith.constant 0 : index
    %c0_3 = arith.constant 0 : index
    %3 = vector.load %arg2[%c0_2, %c0_3] : memref<32x32xbf16, #tpu.memory_space<vmem>>, vector<32x32xbf16>
    %cst = arith.constant dense<0.000000e+00> : vector<8x32xf32>
    %4 = tpu.matmul %2, %3, %cst {dimension_numbers = #tpu.dot_dimension_numbers<[1], [0], [0], [1], [0, 0, 1, 1], [], []>} : vector<8x32xbf16>, vector<32x32xbf16>, vector<8x32xf32> -> vector<8x32xf32>
    %c0_4 = arith.constant 0 : index
    %c0_5 = arith.constant 0 : index
    %5 = vector.load %arg3[%c0_4, %c0_5] : memref<1x32xf32, #tpu.memory_space<vmem>>, vector<1x32xf32>
    %6 = vector.broadcast %5 : vector<1x32xf32> to vector<8x32xf32>
    %7 = arith.addf %4, %6 : vector<8x32xf32>
    %c0_6 = arith.constant 0 : index
    %c0_7 = arith.constant 0 : index
    %8 = vector.load %arg4[%c0_6, %c0_7] : memref<32x32xbf16, #tpu.memory_space<vmem>>, vector<32x32xbf16>
    %cst_8 = arith.constant dense<0.000000e+00> : vector<8x32xf32>
    %9 = tpu.matmul %2, %8, %cst_8 {dimension_numbers = #tpu.dot_dimension_numbers<[1], [0], [0], [1], [0, 0, 1, 1], [], []>} : vector<8x32xbf16>, vector<32x32xbf16>, vector<8x32xf32> -> vector<8x32xf32>
    %c0_9 = arith.constant 0 : index
    %c0_10 = arith.constant 0 : index
    %10 = vector.load %arg5[%c0_9, %c0_10] : memref<1x32xf32, #tpu.memory_space<vmem>>, vector<1x32xf32>
    %11 = vector.broadcast %10 : vector<1x32xf32> to vector<8x32xf32>
    %12 = arith.addf %9, %11 : vector<8x32xf32>
    %c0_11 = arith.constant 0 : index
    %c0_12 = arith.constant 0 : index
    %13 = vector.load %arg6[%c0_11, %c0_12] : memref<32x32xbf16, #tpu.memory_space<vmem>>, vector<32x32xbf16>
    %cst_13 = arith.constant dense<0.000000e+00> : vector<8x32xf32>
    %14 = tpu.matmul %2, %13, %cst_13 {dimension_numbers = #tpu.dot_dimension_numbers<[1], [0], [0], [1], [0, 0, 1, 1], [], []>} : vector<8x32xbf16>, vector<32x32xbf16>, vector<8x32xf32> -> vector<8x32xf32>
    %c0_14 = arith.constant 0 : index
    %c0_15 = arith.constant 0 : index
    %15 = vector.load %arg7[%c0_14, %c0_15] : memref<1x32xf32, #tpu.memory_space<vmem>>, vector<1x32xf32>
    %16 = vector.broadcast %15 : vector<1x32xf32> to vector<8x32xf32>
    %17 = arith.addf %14, %16 : vector<8x32xf32>
    %18 = vector.extract_strided_slice %7 {offsets = [0, 0], sizes = [8, 8], strides = [1, 1]} : vector<8x32xf32> to vector<8x8xf32>
    %19 = vector.extract_strided_slice %7 {offsets = [0, 8], sizes = [8, 8], strides = [1, 1]} : vector<8x32xf32> to vector<8x8xf32>
    %20 = vector.extract_strided_slice %7 {offsets = [0, 16], sizes = [8, 8], strides = [1, 1]} : vector<8x32xf32> to vector<8x8xf32>
    %21 = vector.extract_strided_slice %7 {offsets = [0, 24], sizes = [8, 8], strides = [1, 1]} : vector<8x32xf32> to vector<8x8xf32>
    %22 = vector.shape_cast %18 : vector<8x8xf32> to vector<1x8x8xf32>
    %23 = vector.shape_cast %19 : vector<8x8xf32> to vector<1x8x8xf32>
    %24 = vector.shape_cast %20 : vector<8x8xf32> to vector<1x8x8xf32>
    %25 = vector.shape_cast %21 : vector<8x8xf32> to vector<1x8x8xf32>
    %26 = tpu.concatenate %22, %23, %24, %25 in 0 : vector<1x8x8xf32>, vector<1x8x8xf32>, vector<1x8x8xf32>, vector<1x8x8xf32> -> vector<4x8x8xf32>
    %27 = arith.truncf %26 : vector<4x8x8xf32> to vector<4x8x8xbf16>
    %28 = vector.extract_strided_slice %12 {offsets = [0, 0], sizes = [8, 8], strides = [1, 1]} : vector<8x32xf32> to vector<8x8xf32>
    %29 = vector.extract_strided_slice %12 {offsets = [0, 8], sizes = [8, 8], strides = [1, 1]} : vector<8x32xf32> to vector<8x8xf32>
    %30 = vector.extract_strided_slice %12 {offsets = [0, 16], sizes = [8, 8], strides = [1, 1]} : vector<8x32xf32> to vector<8x8xf32>
    %31 = vector.extract_strided_slice %12 {offsets = [0, 24], sizes = [8, 8], strides = [1, 1]} : vector<8x32xf32> to vector<8x8xf32>
    %32 = vector.shape_cast %28 : vector<8x8xf32> to vector<1x8x8xf32>
    %33 = vector.shape_cast %29 : vector<8x8xf32> to vector<1x8x8xf32>
    %34 = vector.shape_cast %30 : vector<8x8xf32> to vector<1x8x8xf32>
    %35 = vector.shape_cast %31 : vector<8x8xf32> to vector<1x8x8xf32>
    %36 = tpu.concatenate %32, %33, %34, %35 in 0 : vector<1x8x8xf32>, vector<1x8x8xf32>, vector<1x8x8xf32>, vector<1x8x8xf32> -> vector<4x8x8xf32>
    %37 = arith.truncf %36 : vector<4x8x8xf32> to vector<4x8x8xbf16>
    %38 = vector.extract_strided_slice %17 {offsets = [0, 0], sizes = [8, 8], strides = [1, 1]} : vector<8x32xf32> to vector<8x8xf32>
    %39 = vector.extract_strided_slice %17 {offsets = [0, 8], sizes = [8, 8], strides = [1, 1]} : vector<8x32xf32> to vector<8x8xf32>
    %40 = vector.extract_strided_slice %17 {offsets = [0, 16], sizes = [8, 8], strides = [1, 1]} : vector<8x32xf32> to vector<8x8xf32>
    %41 = vector.extract_strided_slice %17 {offsets = [0, 24], sizes = [8, 8], strides = [1, 1]} : vector<8x32xf32> to vector<8x8xf32>
    %42 = vector.shape_cast %38 : vector<8x8xf32> to vector<1x8x8xf32>
    %43 = vector.shape_cast %39 : vector<8x8xf32> to vector<1x8x8xf32>
    %44 = vector.shape_cast %40 : vector<8x8xf32> to vector<1x8x8xf32>
    %45 = vector.shape_cast %41 : vector<8x8xf32> to vector<1x8x8xf32>
    %46 = tpu.concatenate %42, %43, %44, %45 in 0 : vector<1x8x8xf32>, vector<1x8x8xf32>, vector<1x8x8xf32>, vector<1x8x8xf32> -> vector<4x8x8xf32>
    %47 = arith.truncf %46 : vector<4x8x8xf32> to vector<4x8x8xbf16>
    %48 = tpu.iota {dimensions = array<i32: 0>} : vector<8x8xi32>
    %49 = tpu.iota {dimensions = array<i32: 1>} : vector<8x8xi32>
    %50 = arith.cmpi sle, %49, %48 : vector<8x8xi32>
    %51 = vector.shape_cast %50 : vector<8x8xi1> to vector<1x8x8xi1>
    "tpu.trace_start"() <{level = 10 : i32, message = "gqd,gkd->gqk"}> : () -> ()
    %cst_16 = arith.constant dense<0.000000e+00> : vector<4x8x8xf32>
    %52 = tpu.matmul %27, %37, %cst_16 {dimension_numbers = #tpu.dot_dimension_numbers<[2], [2], [1], [1], [0, 0, 0, 1, 1, 1], [0], [0]>} : vector<4x8x8xbf16>, vector<4x8x8xbf16>, vector<4x8x8xf32> -> vector<4x8x8xf32>
    "tpu.trace_stop"() : () -> ()
    %cst_17 = arith.constant 0.353553385 : f32
    %53 = vector.broadcast %cst_17 : f32 to vector<4x8x8xf32>
    %54 = arith.mulf %52, %53 : vector<4x8x8xf32>
    %cst_18 = arith.constant 0xFF800000 : f32
    %55 = vector.shape_cast %51 : vector<1x8x8xi1> to vector<1x8x8xi1>
    %56 = vector.broadcast %55 : vector<1x8x8xi1> to vector<4x8x8xi1>
    %57 = vector.broadcast %cst_18 : f32 to vector<4x8x8xf32>
    %58 = arith.select %56, %54, %57 : vector<4x8x8xi1>, vector<4x8x8xf32>
    %cst_19 = arith.constant dense<0xFF800000> : vector<4x8xf32>
    %59 = vector.multi_reduction <maximumf>, %58, %cst_19 [2] : vector<4x8x8xf32> to vector<4x8xf32>
    %60 = vector.shape_cast %59 : vector<4x8xf32> to vector<4x8x1xf32>
    %61 = vector.broadcast %60 : vector<4x8x1xf32> to vector<4x8x8xf32>
    %62 = arith.subf %58, %61 : vector<4x8x8xf32>
    %63 = math.exp %62 : vector<4x8x8xf32>
    %cst_20 = arith.constant dense<0.000000e+00> : vector<4x8xf32>
    %64 = vector.multi_reduction <add>, %63, %cst_20 [2] : vector<4x8x8xf32> to vector<4x8xf32>
    %65 = vector.shape_cast %64 : vector<4x8xf32> to vector<4x8x1xf32>
    %66 = tpu.reciprocal %65 {approx = true} : vector<4x8x1xf32> -> vector<4x8x1xf32>
    %67 = vector.broadcast %66 : vector<4x8x1xf32> to vector<4x8x8xf32>
    %68 = arith.mulf %63, %67 : vector<4x8x8xf32>
    %69 = arith.truncf %68 : vector<4x8x8xf32> to vector<4x8x8xbf16>
    "tpu.trace_start"() <{level = 10 : i32, message = "gqk,gkd->gqd"}> : () -> ()
    %cst_21 = arith.constant dense<0.000000e+00> : vector<4x8x8xf32>
    %70 = tpu.matmul %69, %47, %cst_21 {dimension_numbers = #tpu.dot_dimension_numbers<[2], [1], [1], [2], [0, 0, 0, 1, 1, 2], [0], [0]>} : vector<4x8x8xbf16>, vector<4x8x8xbf16>, vector<4x8x8xf32> -> vector<4x8x8xf32>
    "tpu.trace_stop"() : () -> ()
    %71 = vector.extract_strided_slice %70 {offsets = [0, 0, 0], sizes = [1, 8, 8], strides = [1, 1, 1]} : vector<4x8x8xf32> to vector<1x8x8xf32>
    %72 = vector.shape_cast %71 : vector<1x8x8xf32> to vector<8x8xf32>
    %73 = vector.extract_strided_slice %70 {offsets = [1, 0, 0], sizes = [1, 8, 8], strides = [1, 1, 1]} : vector<4x8x8xf32> to vector<1x8x8xf32>
    %74 = vector.shape_cast %73 : vector<1x8x8xf32> to vector<8x8xf32>
    %75 = vector.extract_strided_slice %70 {offsets = [2, 0, 0], sizes = [1, 8, 8], strides = [1, 1, 1]} : vector<4x8x8xf32> to vector<1x8x8xf32>
    %76 = vector.shape_cast %75 : vector<1x8x8xf32> to vector<8x8xf32>
    %77 = vector.extract_strided_slice %70 {offsets = [3, 0, 0], sizes = [1, 8, 8], strides = [1, 1, 1]} : vector<4x8x8xf32> to vector<1x8x8xf32>
    %78 = vector.shape_cast %77 : vector<1x8x8xf32> to vector<8x8xf32>
    %79 = tpu.concatenate %72, %74, %76, %78 in 1 : vector<8x8xf32>, vector<8x8xf32>, vector<8x8xf32>, vector<8x8xf32> -> vector<8x32xf32>
    %80 = arith.truncf %79 : vector<8x32xf32> to vector<8x32xbf16>
    %c0_22 = arith.constant 0 : index
    %c0_23 = arith.constant 0 : index
    %81 = vector.load %arg8[%c0_22, %c0_23] : memref<32x32xbf16, #tpu.memory_space<vmem>>, vector<32x32xbf16>
    %cst_24 = arith.constant dense<0.000000e+00> : vector<8x32xf32>
    %82 = tpu.matmul %80, %81, %cst_24 {dimension_numbers = #tpu.dot_dimension_numbers<[1], [0], [0], [1], [0, 0, 1, 1], [], []>} : vector<8x32xbf16>, vector<32x32xbf16>, vector<8x32xf32> -> vector<8x32xf32>
    %c0_25 = arith.constant 0 : index
    %c0_26 = arith.constant 0 : index
    %83 = vector.load %arg9[%c0_25, %c0_26] : memref<1x32xf32, #tpu.memory_space<vmem>>, vector<1x32xf32>
    %84 = vector.broadcast %83 : vector<1x32xf32> to vector<8x32xf32>
    %85 = arith.addf %82, %84 : vector<8x32xf32>
    %86 = arith.addf %1, %85 : vector<8x32xf32>
    %c0_27 = arith.constant 0 : index
    %c0_28 = arith.constant 0 : index
    %87 = vector.load %arg10[%c0_27, %c0_28] : memref<1x32xf32, #tpu.memory_space<vmem>>, vector<1x32xf32>
    %c0_29 = arith.constant 0 : index
    %c0_30 = arith.constant 0 : index
    %88 = vector.load %arg11[%c0_29, %c0_30] : memref<1x32xf32, #tpu.memory_space<vmem>>, vector<1x32xf32>
    %cst_31 = arith.constant dense<0.000000e+00> : vector<8xf32>
    %89 = vector.multi_reduction <add>, %86, %cst_31 [1] : vector<8x32xf32> to vector<8xf32>
    %90 = vector.shape_cast %89 : vector<8xf32> to vector<8x1xf32>
    %cst_32 = arith.constant 3.200000e+01 : f32
    %91 = vector.broadcast %cst_32 : f32 to vector<8x1xf32>
    %92 = arith.divf %90, %91 : vector<8x1xf32>
    %93 = vector.broadcast %92 : vector<8x1xf32> to vector<8x32xf32>
    %94 = arith.subf %86, %93 : vector<8x32xf32>
    %95 = arith.mulf %94, %94 : vector<8x32xf32>
    %cst_33 = arith.constant dense<0.000000e+00> : vector<8xf32>
    %96 = vector.multi_reduction <add>, %95, %cst_33 [1] : vector<8x32xf32> to vector<8xf32>
    %97 = vector.shape_cast %96 : vector<8xf32> to vector<8x1xf32>
    %cst_34 = arith.constant 3.200000e+01 : f32
    %98 = vector.broadcast %cst_34 : f32 to vector<8x1xf32>
    %99 = arith.divf %97, %98 : vector<8x1xf32>
    %100 = vector.broadcast %92 : vector<8x1xf32> to vector<8x32xf32>
    %101 = arith.subf %86, %100 : vector<8x32xf32>
    %cst_35 = arith.constant 9.99999974E-6 : f32
    %102 = vector.broadcast %cst_35 : f32 to vector<8x1xf32>
    %103 = arith.addf %99, %102 : vector<8x1xf32>
    %104 = math.rsqrt %103 : vector<8x1xf32>
    %105 = vector.broadcast %104 : vector<8x1xf32> to vector<8x32xf32>
    %106 = arith.mulf %101, %105 : vector<8x32xf32>
    %107 = vector.broadcast %87 : vector<1x32xf32> to vector<8x32xf32>
    %108 = arith.mulf %106, %107 : vector<8x32xf32>
    %109 = vector.broadcast %88 : vector<1x32xf32> to vector<8x32xf32>
    %110 = arith.addf %108, %109 : vector<8x32xf32>
    %111 = arith.truncf %110 : vector<8x32xf32> to vector<8x32xbf16>
    %c0_36 = arith.constant 0 : index
    %c0_37 = arith.constant 0 : index
    %112 = vector.load %arg12[%c0_36, %c0_37] : memref<32x128xbf16, #tpu.memory_space<vmem>>, vector<32x128xbf16>
    %cst_38 = arith.constant dense<0.000000e+00> : vector<8x128xf32>
    %113 = tpu.matmul %111, %112, %cst_38 {dimension_numbers = #tpu.dot_dimension_numbers<[1], [0], [0], [1], [0, 0, 1, 1], [], []>} : vector<8x32xbf16>, vector<32x128xbf16>, vector<8x128xf32> -> vector<8x128xf32>
    %c0_39 = arith.constant 0 : index
    %c0_40 = arith.constant 0 : index
    %114 = vector.load %arg13[%c0_39, %c0_40] : memref<1x128xf32, #tpu.memory_space<vmem>>, vector<1x128xf32>
    %115 = vector.broadcast %114 : vector<1x128xf32> to vector<8x128xf32>
    %116 = arith.addf %113, %115 : vector<8x128xf32>
    %cst_41 = arith.constant 5.000000e-01 : f32
    %117 = vector.broadcast %cst_41 : f32 to vector<8x128xf32>
    %118 = arith.mulf %117, %116 : vector<8x128xf32>
    %cst_42 = arith.constant 0.707106769 : f32
    %119 = vector.broadcast %cst_42 : f32 to vector<8x128xf32>
    %120 = arith.mulf %116, %119 : vector<8x128xf32>
    %121 = math.erf %120 : vector<8x128xf32>
    %cst_43 = arith.constant 1.000000e+00 : f32
    %122 = vector.broadcast %cst_43 : f32 to vector<8x128xf32>
    %123 = arith.addf %122, %121 : vector<8x128xf32>
    %124 = arith.mulf %118, %123 : vector<8x128xf32>
    %125 = arith.truncf %124 : vector<8x128xf32> to vector<8x128xbf16>
    %c0_44 = arith.constant 0 : index
    %c0_45 = arith.constant 0 : index
    %126 = vector.load %arg14[%c0_44, %c0_45] : memref<128x32xbf16, #tpu.memory_space<vmem>>, vector<128x32xbf16>
    %cst_46 = arith.constant dense<0.000000e+00> : vector<8x32xf32>
    %127 = tpu.matmul %125, %126, %cst_46 {dimension_numbers = #tpu.dot_dimension_numbers<[1], [0], [0], [1], [0, 0, 1, 1], [], []>} : vector<8x128xbf16>, vector<128x32xbf16>, vector<8x32xf32> -> vector<8x32xf32>
    %c0_47 = arith.constant 0 : index
    %c0_48 = arith.constant 0 : index
    %128 = vector.load %arg15[%c0_47, %c0_48] : memref<1x32xf32, #tpu.memory_space<vmem>>, vector<1x32xf32>
    %129 = vector.broadcast %128 : vector<1x32xf32> to vector<8x32xf32>
    %130 = arith.addf %127, %129 : vector<8x32xf32>
    %131 = arith.addf %110, %130 : vector<8x32xf32>
    %c0_49 = arith.constant 0 : index
    %c0_50 = arith.constant 0 : index
    %132 = vector.load %arg16[%c0_49, %c0_50] : memref<1x32xf32, #tpu.memory_space<vmem>>, vector<1x32xf32>
    %c0_51 = arith.constant 0 : index
    %c0_52 = arith.constant 0 : index
    %133 = vector.load %arg17[%c0_51, %c0_52] : memref<1x32xf32, #tpu.memory_space<vmem>>, vector<1x32xf32>
    %cst_53 = arith.constant dense<0.000000e+00> : vector<8xf32>
    %134 = vector.multi_reduction <add>, %131, %cst_53 [1] : vector<8x32xf32> to vector<8xf32>
    %135 = vector.shape_cast %134 : vector<8xf32> to vector<8x1xf32>
    %cst_54 = arith.constant 3.200000e+01 : f32
    %136 = vector.broadcast %cst_54 : f32 to vector<8x1xf32>
    %137 = arith.divf %135, %136 : vector<8x1xf32>
    %138 = vector.broadcast %137 : vector<8x1xf32> to vector<8x32xf32>
    %139 = arith.subf %131, %138 : vector<8x32xf32>
    %140 = arith.mulf %139, %139 : vector<8x32xf32>
    %cst_55 = arith.constant dense<0.000000e+00> : vector<8xf32>
    %141 = vector.multi_reduction <add>, %140, %cst_55 [1] : vector<8x32xf32> to vector<8xf32>
    %142 = vector.shape_cast %141 : vector<8xf32> to vector<8x1xf32>
    %cst_56 = arith.constant 3.200000e+01 : f32
    %143 = vector.broadcast %cst_56 : f32 to vector<8x1xf32>
    %144 = arith.divf %142, %143 : vector<8x1xf32>
    %145 = vector.broadcast %137 : vector<8x1xf32> to vector<8x32xf32>
    %146 = arith.subf %131, %145 : vector<8x32xf32>
    %cst_57 = arith.constant 9.99999974E-6 : f32
    %147 = vector.broadcast %cst_57 : f32 to vector<8x1xf32>
    %148 = arith.addf %144, %147 : vector<8x1xf32>
    %149 = math.rsqrt %148 : vector<8x1xf32>
    %150 = vector.broadcast %149 : vector<8x1xf32> to vector<8x32xf32>
    %151 = arith.mulf %146, %150 : vector<8x32xf32>
    %152 = vector.broadcast %132 : vector<1x32xf32> to vector<8x32xf32>
    %153 = arith.mulf %151, %152 : vector<8x32xf32>
    %154 = vector.broadcast %133 : vector<1x32xf32> to vector<8x32xf32>
    %155 = arith.addf %153, %154 : vector<8x32xf32>
    %156 = vector.shape_cast %155 : vector<8x32xf32> to vector<1x8x32xf32>
    %c0_58 = arith.constant 0 : index
    %c0_59 = arith.constant 0 : index
    %c0_60 = arith.constant 0 : index
    %157 = vector.load %arg18[%c0_58, %c0_59, %c0_60] : memref<1x8x32xf32, #tpu.memory_space<vmem>>, vector<1x8x32xf32>
    tpu.vector_store %arg18[%c0_58, %c0_59, %c0_60], %156 {strides = array<i32>} : memref<1x8x32xf32, #tpu.memory_space<vmem>>, vector<1x8x32xf32>,
    return
  }
  func.func @transform_0(%arg0: i32) -> (i32, i32, i32) {
    %c0_i32 = arith.constant 0 : i32
    %c0_i32_0 = arith.constant 0 : i32
    %c0_i32_1 = arith.constant 0 : i32
    return %arg0, %c0_i32, %c0_i32_0 : i32, i32, i32
  }
  func.func @transform_1(%arg0: i32) -> (i32, i32) {
    %c0_i32 = arith.constant 0 : i32
    %c0_i32_0 = arith.constant 0 : i32
    %c0_i32_1 = arith.constant 0 : i32
    return %c0_i32, %c0_i32_0 : i32, i32
  }
  func.func @transform_2(%arg0: i32) -> (i32, i32) {
    %c0_i32 = arith.constant 0 : i32
    %c0_i32_0 = arith.constant 0 : i32
    %c0_i32_1 = arith.constant 0 : i32
    return %c0_i32, %c0_i32_0 : i32, i32
  }
  func.func @transform_3(%arg0: i32) -> (i32, i32) {
    %c0_i32 = arith.constant 0 : i32
    %c0_i32_0 = arith.constant 0 : i32
    %c0_i32_1 = arith.constant 0 : i32
    return %c0_i32, %c0_i32_0 : i32, i32
  }
  func.func @transform_4(%arg0: i32) -> (i32, i32) {
    %c0_i32 = arith.constant 0 : i32
    %c0_i32_0 = arith.constant 0 : i32
    %c0_i32_1 = arith.constant 0 : i32
    return %c0_i32, %c0_i32_0 : i32, i32
  }
  func.func @transform_5(%arg0: i32) -> (i32, i32) {
    %c0_i32 = arith.constant 0 : i32
    %c0_i32_0 = arith.constant 0 : i32
    %c0_i32_1 = arith.constant 0 : i32
    return %c0_i32, %c0_i32_0 : i32, i32
  }
  func.func @transform_6(%arg0: i32) -> (i32, i32) {
    %c0_i32 = arith.constant 0 : i32
    %c0_i32_0 = arith.constant 0 : i32
    %c0_i32_1 = arith.constant 0 : i32
    return %c0_i32, %c0_i32_0 : i32, i32
  }
  func.func @transform_7(%arg0: i32) -> (i32, i32) {
    %c0_i32 = arith.constant 0 : i32
    %c0_i32_0 = arith.constant 0 : i32
    %c0_i32_1 = arith.constant 0 : i32
    return %c0_i32, %c0_i32_0 : i32, i32
  }
  func.func @transform_8(%arg0: i32) -> (i32, i32) {
    %c0_i32 = arith.constant 0 : i32
    %c0_i32_0 = arith.constant 0 : i32
    %c0_i32_1 = arith.constant 0 : i32
    return %c0_i32, %c0_i32_0 : i32, i32
  }
  func.func @transform_9(%arg0: i32) -> (i32, i32) {
    %c0_i32 = arith.constant 0 : i32
    %c0_i32_0 = arith.constant 0 : i32
    %c0_i32_1 = arith.constant 0 : i32
    return %c0_i32, %c0_i32_0 : i32, i32
  }
  func.func @transform_10(%arg0: i32) -> (i32, i32) {
    %c0_i32 = arith.constant 0 : i32
    %c0_i32_0 = arith.constant 0 : i32
    %c0_i32_1 = arith.constant 0 : i32
    return %c0_i32, %c0_i32_0 : i32, i32
  }
  func.func @transform_11(%arg0: i32) -> (i32, i32) {
    %c0_i32 = arith.constant 0 : i32
    %c0_i32_0 = arith.constant 0 : i32
    %c0_i32_1 = arith.constant 0 : i32
    return %c0_i32, %c0_i32_0 : i32, i32
  }
  func.func @transform_12(%arg0: i32) -> (i32, i32) {
    %c0_i32 = arith.constant 0 : i32
    %c0_i32_0 = arith.constant 0 : i32
    %c0_i32_1 = arith.constant 0 : i32
    return %c0_i32, %c0_i32_0 : i32, i32
  }
  func.func @transform_13(%arg0: i32) -> (i32, i32) {
    %c0_i32 = arith.constant 0 : i32
    %c0_i32_0 = arith.constant 0 : i32
    %c0_i32_1 = arith.constant 0 : i32
    return %c0_i32, %c0_i32_0 : i32, i32
  }
  func.func @transform_14(%arg0: i32) -> (i32, i32) {
    %c0_i32 = arith.constant 0 : i32
    %c0_i32_0 = arith.constant 0 : i32
    %c0_i32_1 = arith.constant 0 : i32
    return %c0_i32, %c0_i32_0 : i32, i32
  }
  func.func @transform_15(%arg0: i32) -> (i32, i32) {
    %c0_i32 = arith.constant 0 : i32
    %c0_i32_0 = arith.constant 0 : i32
    %c0_i32_1 = arith.constant 0 : i32
    return %c0_i32, %c0_i32_0 : i32, i32
  }
  func.func @transform_16(%arg0: i32) -> (i32, i32) {
    %c0_i32 = arith.constant 0 : i32
    %c0_i32_0 = arith.constant 0 : i32
    %c0_i32_1 = arith.constant 0 : i32
    return %c0_i32, %c0_i32_0 : i32, i32
  }
  func.func @transform_17(%arg0: i32) -> (i32, i32, i32) {
    %c0_i32 = arith.constant 0 : i32
    %c0_i32_0 = arith.constant 0 : i32
    %c0_i32_1 = arith.constant 0 : i32
    return %arg0, %c0_i32, %c0_i32_0 : i32, i32, i32
  }
}

</mosaic_0001>

<bundles_post_ra>
// kernel: tpu_custom_call.1
= control target key start
LH: loop header
LB: loop body
LE: loop exit
PB: predicated region body
PF: predicated region fallthrough
CT: control target
= control target key end

     0   :  { %s2656_s0 = inlined_call_operand.vmem [shape: f32[2,8,32], index: 0, kind: input, shape index: {}]   ;;  %s2657_s1 = inlined_call_operand.vmem [shape: bf16[32,32], index: 1, kind: input, shape index: {}]   ;;  %s2658_s2 = inlined_call_operand.vmem [shape: f32[1,32], index: 2, kind: input, shape index: {}]   ;;  %s2659_s3 = inlined_call_operand.vmem [shape: bf16[32,32], index: 3, kind: input, shape index: {}]   ;;  %s2660_s4 = inlined_call_operand.vmem [shape: f32[1,32], index: 4, kind: input, shape index: {}]   ;;  %s2661_s5 = inlined_call_operand.vmem [shape: bf16[32,32], index: 5, kind: input, shape index: {}]   ;;  %s2662_s6 = inlined_call_operand.hbm [shape: f32[1,32], index: 6, kind: input, shape index: {}]   ;;  %s2663_s7 = inlined_call_operand.vmem [shape: bf16[32,32], index: 7, kind: input, shape index: {}]   ;;  %s2664_s8 = inlined_call_operand.hbm [shape: f32[1,32], index: 8, kind: input, shape index: {}]   ;;  %s2665_s9 = inlined_call_operand.hbm [shape: f32[1,32], index: 9, kind: input, shape index: {}]   ;;  %s2666_s10 = inlined_call_operand.vmem [shape: f32[1,32], index: 10, kind: input, shape index: {}]   ;;  %s2667_s11 = inlined_call_operand.vmem [shape: bf16[32,128], index: 11, kind: input, shape index: {}]   ;;  %s2668_s12 = inlined_call_operand.vmem [shape: f32[1,128], index: 12, kind: input, shape index: {}]   ;;  %s2669_s13 = inlined_call_operand.vmem [shape: bf16[128,32], index: 13, kind: input, shape index: {}]   ;;  %s2670_s14 = inlined_call_operand.vmem [shape: f32[1,32], index: 14, kind: input, shape index: {}]   ;;  %s2671_s15 = inlined_call_operand.vmem [shape: f32[1,32], index: 15, kind: input, shape index: {}]   ;;  %s2672_s16 = inlined_call_operand.vmem [shape: f32[1,32], index: 16, kind: input, shape index: {}]   ;;  %s2673_s17 = inlined_call_operand.hbm [shape: f32[2,8,32], index: 17, kind: output, shape index: {}]  }
   0x1   :  { %2686 = sst [smem:[#allocation18_spill]] %s2656_s0 }
   0x2   :  { %2687 = sst [smem:[#allocation19_spill]] %s2657_s1 }
   0x3   :  { %2688 = sst [smem:[#allocation20_spill]] %s2671_s15 }
   0x4   :  { %2689 = sst [smem:[#allocation21_spill]] %s2672_s16 }
   0x5   :  { %2690 = sst [smem:[#allocation22_spill]] %s2673_s17 }
   0x6   :  { %22 = vsyncpa [#allocation3], 0 }
   0x7   :  { %23 = vsyncpa [#allocation6], 0 }
   0x8   :  { %24 = vsyncpa [#allocation4], 0 }
   0x9   :  { %26 = vsyncpa [#allocation4 + $0x1], 0  ;;  %s2268_s24 = smov 0   ;;  %s2270_s25 = smov 0  }
   0xa   :  { %s2272_s26 = smov 0   ;;  %s2274_s27 = smov 0  }
   0xb LB: > { %2691 = sst [smem:[#allocation12_spill]] %s2152_s24  ;;  %s2289_s28 = sadd.s32 4294967295, %s2164_s27   ;;  %s2164_s27 = sphi %s2274_s27, %s2717_s27   ;;  %s2160_s26 = sphi %s2272_s26, %s2719_s26   ;;  %s2156_s25 = sphi %s2270_s25, %s2721_s25   ;;  %s2152_s24 = sphi %s2268_s24, %s2720_s24  }
   0xc   : > { %2692 = sst [smem:[#allocation13_spill]] %s2160_s26  ;;  %s1687_s29 = sadd.s32 4294967294, %s2164_s27  }
   0xd   : > { %2693 = sst [smem:[#allocation14_spill]] %s2164_s27  ;;  %s2293_s0 = sadd.s32 1, %s2164_s27  }
   0xe   : > { %2694 = sst [smem:[#allocation15_spill]] %s2293_s0  ;;  %s401_s30 = sadd.s32 1, %s2160_s26 }
   0xf   : > { %s398_s18 = ssub.s32 %s2164_s27, %s2293_s0  ;;  %p411_p0 = scmp.ne.s32.totalorder %s2160_s26, %s2156_s25 }
  0x10   : > { %p399_p1 = scmp.eq.s32.totalorder %s398_s18, 0  ;;  %p412_p2 = scmp.eq.s32.totalorder %s2289_s28, 1 }
  0x11   : > { %p417_p3 = scmp.ne.s32.totalorder %s2156_s25, %s2152_s24  ;;  %p418_p4 = scmp.eq.s32.totalorder %s1687_s29, 1 }
  0x12   : > { %s2304_s19 = scalar_select %p399_p1, %s2160_s26, %s401_s30  }
  0x13   : > { %p2306_p5 = por %p412_p2, %p411_p0  ;;  %p2310_p6 = por %p418_p4, %p417_p3 }
  0x14   : > { %2695 = sst [smem:[#allocation16_spill]] %s2304_s19  ;;  %p1688_p7 = scmp.ge.s32.totalorder %s2164_s27, 1 }
  0x15   : > { %s2696_s1 = scalar_select %p2306_p5, 1, 0 }
  0x16   : > { %s2697_s20 = scalar_select %p2310_p6, 1, 0 }
  0x17   : > { %p425_p8 = scmp.lt.s32.totalorder %s2164_s27, 3  ;;  %p2682_p9 = scmp.eq.s32.totalorder %s2289_s28, 0 }
  0x18   : > { %2698 = sst [smem:[#allocation17_spill]] %s2697_s20  ;;  %s2166_s22 = smov [#allocation5]  }
  0x19   : > { %p2317_p10 = pnand %p1688_p7, %p425_p8  ;;  %s467_s23 = sshll.u32 %s2166_s22, 4  ;;  %s468_s23 = int_to_ptr.vmem [resolvable:$true] %s467_s23 }
  0x1a   : > { %s2167_s29 = smov [#allocation2]   ;;  %s2168_s19 = smov [#allocation7]  }
  0x1b   : > { %s2699_s21 = scalar_select %p2317_p10, 1, 0 }
  0x1c   : > { %p1906_p11 = pneg %p2317_p10  ;;  %s453_s30 = sshll.u32 %s2167_s29, 4  ;;  %s2329_s30 = int_to_ptr.vmem [resolvable:$true] %s453_s30 }
  0x1d   : > { %s478_s26 = sshll.u32 %s2168_s19, 4  ;;  %s2010_s22 = scalar_lea.hbm %s2664_s8, 16  ;;  %s2331_s26 = int_to_ptr.vmem [resolvable:$true] %s478_s26 }
  0x1e   : > { %p2325_p12 = pnand %p2682_p9, %p1906_p11  ;;  %p2011_p13 = scmp.ne.s32.totalorder %s2664_s8, %s2010_s22 }
  0x1f   : > { %p2017_p3 = scmp.lt.u32.totalorder %s2010_s22, %s2664_s8 }
  0x20   : > { %p2341_p0 = pneg %p2325_p12 }
  0x22   : > { %p2013_p1 = pnand %p2341_p0, %p2011_p13 }
  0x24   : > { %p2014_p2 = pneg %p2013_p1 }
  0x26   : > { %p2019_p4 = pnand %p2017_p3, %p2014_p2 }
  0x28   : > { %2022 = shalt.err (!%p2019_p4)
}
  0x29   : > { %s2023_s0 = scalar_lea.vmem %s468_s23, 16  ;;  %s2030_s24 = scalar_lea.vmem %s468_s23, 32 }
  0x2a   : > { %p2024_p7 = scmp.ne.s32.totalorder %s468_s23, %s2023_s0  ;;  %p2031_p9 = scmp.lt.s32.totalorder %s468_s23, %s468_s23 }
  0x2b   : > { %p2032_p6 = scmp.lt.s32.totalorder %s2030_s24, %s2023_s0 }
  0x2c   : > { %p2026_p8 = pnand %p2024_p7, %p2341_p0 }
  0x2d   : > { %p2033_p5 = por %p2032_p6, %p2031_p9 }
  0x2e   : > { %p2027_p11 = pneg %p2026_p8 }
  0x30   : > { %p2034_p10 = pnand %p2033_p5, %p2027_p11 }
  0x32   : > { %2037 = shalt.err (!%p2034_p10)
}
  0x33   : > { %1912 = dma.hbm_to_vmem [thread:$0]  (!%p2325_p12), %s2664_s8, 16, %s468_s23, [#allocation6]  }
  0x34   : > { %s2038_s19 = scalar_lea.hbm %s2662_s6, 16 }
  0x35   : > { %p2039_p13 = scmp.ne.s32.totalorder %s2662_s6, %s2038_s19  ;;  %p2045_p5 = scmp.lt.u32.totalorder %s2038_s19, %s2662_s6 }
  0x37   : > { %p2041_p1 = pnand %p2039_p13, %p2341_p0 }
  0x39   : > { %p2042_p6 = pneg %p2041_p1 }
  0x3b   : > { %p2047_p9 = pnand %p2045_p5, %p2042_p6 }
  0x3d   : > { %2050 = shalt.err (!%p2047_p9)
}
  0x3e   : > { %s2051_s23 = scalar_lea.vmem %s2329_s30, 16  ;;  %s2058_s15 = scalar_lea.vmem %s2329_s30, 32 }
  0x3f   : > { %p2052_p10 = scmp.ne.s32.totalorder %s2329_s30, %s2051_s23  ;;  %p2059_p4 = scmp.lt.s32.totalorder %s2329_s30, %s2329_s30 }
  0x40   : > { %p2060_p7 = scmp.lt.s32.totalorder %s2058_s15, %s2051_s23 }
  0x41   : > { %p2054_p2 = pnand %p2052_p10, %p2341_p0 }
  0x42   : > { %p2061_p8 = por %p2060_p7, %p2059_p4 }
  0x43   : > { %p2055_p3 = pneg %p2054_p2 }
  0x45   : > { %p2062_p11 = pnand %p2061_p8, %p2055_p3 }
  0x47   : > { %2065 = shalt.err (!%p2062_p11)
}
  0x48   : > { %1909 = dma.hbm_to_vmem [thread:$0]  (!%p2325_p12), %s2662_s6, 16, %s2329_s30, [#allocation3]  }
  0x49   : > { %s2066_s22 = scalar_lea.hbm %s2665_s9, 16 }
  0x4a   : > { %p2067_p13 = scmp.ne.s32.totalorder %s2665_s9, %s2066_s22  ;;  %p2073_p5 = scmp.lt.u32.totalorder %s2066_s22, %s2665_s9 }
  0x4c   : > { %p2069_p1 = pnand %p2067_p13, %p2341_p0 }
  0x4e   : > { %p2070_p6 = pneg %p2069_p1 }
  0x50   : > { %p2075_p9 = pnand %p2073_p5, %p2070_p6 }
  0x52   : > { %2078 = shalt.err (!%p2075_p9)
}
  0x53   : > { %s2079_s30 = scalar_lea.vmem %s2331_s26, 16  ;;  %s2086_s15 = scalar_lea.vmem %s2331_s26, 32 }
  0x54   : > { %p2080_p10 = scmp.ne.s32.totalorder %s2331_s26, %s2079_s30  ;;  %p2087_p4 = scmp.lt.s32.totalorder %s2331_s26, %s2331_s26 }
  0x55   : > { %p2088_p7 = scmp.lt.s32.totalorder %s2086_s15, %s2079_s30 }
  0x56   : > { %p2082_p2 = pnand %p2080_p10, %p2341_p0 }
  0x57   : > { %p2089_p8 = por %p2088_p7, %p2087_p4 }
  0x58   : > { %p2083_p3 = pneg %p2082_p2 }
  0x5a   : > { %p2090_p11 = pnand %p2089_p8, %p2083_p3 }
  0x5c   : > { %2093 = shalt.err (!%p2090_p11)
}
  0x5d   : > { %1915 = dma.hbm_to_vmem [thread:$0]  (!%p2325_p12), %s2665_s9, 16, %s2331_s26, [#allocation6]  }
  0x5e   : > { %p2702_p13 = scmp.ne.s32.totalorder %s2699_s21, 0 }
  0x5f   : > { %p2703_p0 = scmp.eq.s32.totalorder (!%p2702_p13), %s2289_s28, 0 }
  0x60   : > { %519 = sbr.rel (%p2702_p13) target bundleno = 2645 (0xa55), region = 88 }
  0x67   : > { %2139 = dma.done.wait (%p2703_p0), [#allocation3], 16   ;;  %p2704_p1 = pmov %p2703_p0 }
  0x68   : > { %p2705_p6 = pmov %p2703_p0 }
  0x69   : > { %2141 = vsyncadd (%p2704_p1), [#allocation3], 4294967280 }
  0x6a   : > { %2143 = dma.done.wait (%p2705_p6), [#allocation6], 32   ;;  %p2706_p5 = pmov %p2703_p0 }
  0x6b   : > { %p578_p9 = scmp.lt.s32.totalorder %s2289_s28, 1  ;;  %v2169_v0 = vmov 0.0   ;;  %vm2170_vm0 = vmmov 0   ;;  %s2707_s20 = sld [smem:[#allocation18_spill]]  ;;  %vm608_vm1 = vcmask 261120   ;;  %v1972_v4 = vld [vmem:[%s2659_s3] sm:$0xff]   ;;  %v820_v47 = vlaneseq }
  0x6c   : > { %2145 = vsyncadd (%p2706_p5), [#allocation6], 4294967264  ;;  %1784 = vmatprep.subr.bf16.mxu0 %v2169_v0  ;;  %1788 = vmatprep.mubr.msk.bf16.mxu0 %vm2170_vm0, %v2169_v0  ;;  %s2708_s0 = sld [smem:[#allocation19_spill]]  ;;  %v1973_v6 = vld [vmem:[%s2659_s3 + $0x8] sm:$0xff]   ;;  %v1974_v7 = vld [vmem:[%s2661_s5] sm:$0xff]   ;;  %s2171_s22 = smov 120  }
  0x6d   : > { %s579_s26 = scalar_select %p578_p9, %s2289_s28, 1  ;;  %1808 = vmatprep.subr.bf16.mxu1 %v2169_v0  ;;  %1810 = vmatprep.mubr.msk.bf16.mxu1 %vm2170_vm0, %v2169_v0  ;;  %v1975_v8 = vld [vmem:[%s2661_s5 + $0x8] sm:$0xff]   ;;  %v1699_v9 = vld [vmem:[%s2658_s2] ss:$0 sm:$0xff]  ;;  %vm825_vm2 = vcmask 64512   ;;  %vm1071_vm3 = vcmask 1043456  }
  0x6e   : > { %v1703_v15 = vld [vmem:[%s2660_s4] ss:$0 sm:$0xff]  ;;  %s2172_s23 = smov 104   ;;  %s2173_s30 = smov 112   ;;  %v821_v48 = vshrl.u32 %v820_v47, 7  ;;  %v823_v49 = vand.u32 127, %v820_v47 }
  0x6f   : > { %s1698_s21 = sshll.u32 %s579_s26, 3  ;;  %v1707_v39 = vld [vmem:[#allocation2] ss:$0 sm:$0xff]  ;;  %s2175_s18 = smov 16   ;;  %vm1266_vm5 = vcmask 130048   ;;  %vm1268_vm6 = vcmask 195584  }
  0x70   : > { %vm824_vm4 = vcmp.le.s32.totalorder %v823_v49, %v821_v48  ;;  %s2176_s29 = smov 24   ;;  %p2712_p10 = scmp.ne.s32.totalorder %s2696_s1, 0 }
  0x71   : > { %s581_s17 = scalar_lea.vmem %s2707_s20, %s1698_s21  ;;  %s2174_s21 = smov 8  }
  0x72   : > { %v1970_v1 = vld [vmem:[%s2708_s0] sm:$0xff]   ;;  %v1971_v2 = vld [vmem:[%s2708_s0 + $0x8] sm:$0xff]  }
  0x73   : > { %1785 = vmatpush3.bf16.msra.mxu0 %v1970_v1  ;;  %v2432_v3 = vld [vmem:[%s581_s17] sm:$0xff] }
  0x74   : > { %1786 = vmatprep.subr.bf16.mxu0 %v2169_v0  ;;  %v584_v5 = vpack.c.bf16 %v2432_v3, %v2432_v3 }
  0x77   : > { %1787 = vmatpush3.bf16.msra.mxu0 %v1971_v2 }
  0x78   : > { %1792 = vmatprep.subr.bf16.mxu0 %v2169_v0 }
  0x7a   : > { %1789 = vmatmul.mubr.msk.bf16.vlgmr.msra.gmra.mrb[0].mxu0 %vm608_vm1, %v584_v5 }
  0x7b   : > { %1793 = vmatpush3.bf16.msra.mxu0 %v1972_v4  ;;  %1796 = vmatprep.mubr.msk.bf16.mxu0 %vm2170_vm0, %v2169_v0 }
  0x7c   : > { %1794 = vmatprep.subr.bf16.mxu0 %v2169_v0 }
  0x7f   : > { %1795 = vmatpush3.bf16.msra.mxu0 %v1973_v6 }
  0x80   : > { %1800 = vmatprep.subr.bf16.mxu0 %v2169_v0 }
  0x82   : > { %1797 = vmatmul.mubr.msk.bf16.vlgmr.msra.gmra.mrb[4].mxu0 %vm608_vm1, %v584_v5 }
  0x83   : > { %1804 = vmatprep.mubr.msk.bf16.mxu0 %vm2170_vm0, %v2169_v0  ;;  %1801 = vmatpush3.bf16.msra.mxu0 %v1974_v7 }
  0x84   : > { %1802 = vmatprep.subr.bf16.mxu0 %v2169_v0 }
  0x87   : > { %1803 = vmatpush3.bf16.msra.mxu0 %v1975_v8 }
  0x88   : > { %1814 = vmatprep.subr.bf16.mxu0 %v2169_v0 }
  0x8a   : > { %1805 = vmatmul.mubr.msk.bf16.vlgmr.msra.gmra.mrb[8].mxu0 %vm608_vm1, %v584_v5 }
  0x8b   : > { %1816 = vmatprep.mubr.msk.bf16.mxu0 %vm2170_vm0, %v2169_v0 }
 0x14d   : > { %v646_v10 = vpop.f32.mrb[0].mxu0 }
 0x14e   : > { %v647_v11 = vadd.f32 %v1699_v9, %v646_v10  ;;  %v1790_v12 = vpop.f32.mrb[1].mxu0 }
 0x14f   : > { %v649_v13 = vpop.f32.mrb[2].mxu0 }
 0x150   : > { %779 = vrot.lane.b32.xlu1 %v647_v11, %s2171_s22  ;;  %v1791_v14 = vpop.f32.mrb[3].mxu0  ;;  %v788_v23 = vpack.c.bf16 %v647_v11, %v647_v11 }
 0x155   : > { %v709_v16 = vpop.f32.mrb[4].mxu0 }
 0x156   : > { %v710_v17 = vadd.f32 %v1703_v15, %v709_v16  ;;  %v1798_v18 = vpop.f32.mrb[5].mxu0 }
 0x157   : > { %v712_v19 = vpop.f32.mrb[6].mxu0 }
 0x158   : > { %799 = vrot.lane.b32.xlu1 %v710_v17, %s2172_s23  ;;  %793 = vrot.lane.b32.xlu0 %v710_v17, %s2171_s22  ;;  %v1799_v20 = vpop.f32.mrb[7].mxu0  ;;  %v802_v21 = vpack.c.bf16 %v710_v17, %v710_v17 }
 0x15a   : > { %v830_v22 = vsel %vm825_vm2, %v802_v21, 0 }
 0x15b   : > { %1809 = vmatpush3.bf16.xpose.msra.mxu1 %v830_v22 }
 0x15c   : > { %785 = vrot.lane.b32.xlu1 %v647_v11, %s2172_s23  ;;  %796 = vrot.lane.b32.xlu0 %v710_v17, %s2173_s30 }
 0x15d   : > { %1820 = vmatprep.subr.bf16.mxu1 %v2169_v0  ;;  %v772_v40 = vpop.f32.mrb[8].mxu0 }
 0x15e   : > { %v2495_v41 = vadd.f32 %v1707_v39, %v772_v40  ;;  %v1806_v42 = vpop.f32.mrb[9].mxu0 }
 0x15f   : > { %v775_v43 = vpop.f32.mrb[10].mxu0 }
 0x160   : > { %782 = vrot.lane.b32.xlu0 %v647_v11, %s2173_s30  ;;  %v1807_v44 = vpop.f32.mrb[11].mxu0  ;;  %v816_v45 = vpack.c.bf16 %v2495_v41, %v2495_v41 }
 0x162   : > { %1811 = vmatmul.mubr.msk.bf16.vlgmr.msra.gmra.mrb[0].mxu1 %vm825_vm2, %v788_v23  ;;  %v1073_v46 = vsel %vm1071_vm3, %v816_v45, 0 }
 0x163   : > { %1822 = vmatprep.mubr.msk.bf16.mxu1 %vm2170_vm0, %v2169_v0 }
 0x1c2   : > { %v780_v24 = vpop.permute.xlu1 %779 }
 0x1c3   : > { %v789_v33 = vpack.c.bf16 %v780_v24, %v780_v24 }
 0x1ca   : > { %v794_v25 = vpop.permute.xlu0 %793  ;;  %v800_v28 = vpop.permute.xlu1 %799 }
 0x1cb   : > { %v803_v26 = vpack.c.bf16 %v794_v25, %v794_v25  ;;  %v805_v31 = vpack.c.bf16 %v800_v28, %v800_v28 }
 0x1cd   : > { %v876_v27 = vsel %vm825_vm2, %v803_v26, 0  ;;  %v968_v35 = vsel %vm825_vm2, %v805_v31, 0 }
 0x1ce   : > { %1815 = vmatpush3.bf16.xpose.msra.mxu0 %v876_v27  ;;  %v797_v29 = vpop.permute.xlu0 %796  ;;  %v786_v37 = vpop.permute.xlu1 %785 }
 0x1cf   : > { %v804_v30 = vpack.c.bf16 %v797_v29, %v797_v29  ;;  %1826 = vmatprep.subr.bf16.mxu0 %v2169_v0  ;;  %v791_v38 = vpack.c.bf16 %v786_v37, %v786_v37 }
 0x1d1   : > { %v922_v32 = vsel %vm825_vm2, %v804_v30, 0 }
 0x1d2   : > { %1821 = vmatpush3.bf16.xpose.msra.mxu1 %v922_v32  ;;  %v783_v34 = vpop.permute.xlu0 %782 }
 0x1d3   : > { %1832 = vmatprep.subr.bf16.mxu1 %v2169_v0  ;;  %v790_v36 = vpack.c.bf16 %v783_v34, %v783_v34 }
 0x1d5   : > { %1817 = vmatmul.mubr.msk.bf16.vlgmr.msra.gmra.mrb[12].mxu0 %vm825_vm2, %v789_v33 }
 0x1d6   : > { %1827 = vmatpush3.bf16.xpose.msra.mxu0 %v968_v35  ;;  %1828 = vmatprep.mubr.msk.bf16.mxu0 %vm2170_vm0, %v2169_v0 }
 0x1d7   : > { %1838 = vmatprep.subr.bf16.mxu0 %v2169_v0 }
 0x1d9   : > { %1823 = vmatmul.mubr.msk.bf16.vlgmr.msra.gmra.mrb[4].mxu1 %vm825_vm2, %v790_v36 }
 0x1da   : > { %1834 = vmatprep.mubr.msk.bf16.mxu1 %vm2170_vm0, %v2169_v0  ;;  %1833 = vmatpush3.bf16.msra.mxu1 %v1073_v46 }
 0x1db   : > { %1844 = vmatprep.subr.bf16.mxu1 %v2169_v0 }
 0x1dd   : > { %1829 = vmatmul.mubr.msk.bf16.vlgmr.msra.gmra.mrb[16].mxu0 %vm825_vm2, %v791_v38 }
 0x1de   : > { %1840 = vmatprep.mubr.msk.bf16.mxu0 %vm2170_vm0, %v2169_v0 }
 0x235   : > { %v866_v50 = vpop.f32.mrb[0].mxu1 }
 0x236   : > { %v1010_v51 = vmul.f32 0.35355338, %v866_v50  ;;  %v1812_v52 = vpop.f32.mrb[1].mxu1 }
 0x237   : > { %v869_v53 = vpop.f32.mrb[2].mxu1 }
 0x238   : > { %v1813_v54 = vpop.f32.mrb[3].mxu1  ;;  %v1016_v55 = vsel %vm824_vm4, %v1010_v51, -inf }
 0x239   : > { %v1020_v56 = vsel %vm825_vm2, %v1016_v55, -inf }
 0x23a   : > { %1021 = vmax.xlane.f32.xlu0 %v1020_v56 }
 0x2a8   : > { %v912_v57 = vpop.f32.mrb[12].mxu0 }
 0x2a9   : > { %v1011_v58 = vmul.f32 0.35355338, %v912_v57  ;;  %v1818_v59 = vpop.f32.mrb[13].mxu0 }
 0x2aa   : > { %v915_v60 = vpop.f32.mrb[14].mxu0 }
 0x2ab   : > { %v1819_v61 = vpop.f32.mrb[15].mxu0  ;;  %v1017_v62 = vsel %vm824_vm4, %v1011_v58, -inf }
 0x2ac   : > { %v958_v63 = vpop.f32.mrb[4].mxu1  ;;  %v1023_v1 = vsel %vm825_vm2, %v1017_v62, -inf }
 0x2ad   : > { %v1012_v2 = vmul.f32 0.35355338, %v958_v63  ;;  %v1824_v4 = vpop.f32.mrb[5].mxu1  ;;  %1024 = vmax.xlane.f32.xlu1 %v1023_v1 }
 0x2ae   : > { %v961_v5 = vpop.f32.mrb[6].mxu1  ;;  %v1977_v4 = vld [vmem:[%s2663_s7 + $0x8] sm:$0xff]  }
 0x2af   : > { %v1825_v6 = vpop.f32.mrb[7].mxu1  ;;  %v1018_v7 = vsel %vm824_vm4, %v1012_v2, -inf  ;;  %v1976_v2 = vld [vmem:[%s2663_s7] sm:$0xff]  }
 0x2b0   : > { %v1004_v8 = vpop.f32.mrb[16].mxu0  ;;  %v1026_v9 = vsel %vm825_vm2, %v1018_v7, -inf }
 0x2b1   : > { %v1013_v10 = vmul.f32 0.35355338, %v1004_v8  ;;  %1027 = vmax.xlane.f32.xlu0 %v1026_v9  ;;  %v1830_v11 = vpop.f32.mrb[17].mxu0 }
 0x2b2   : > { %v1007_v12 = vpop.f32.mrb[18].mxu0 }
 0x2b3   : > { %v1831_v13 = vpop.f32.mrb[19].mxu0  ;;  %v1019_v14 = vsel %vm824_vm4, %v1013_v10, -inf }
 0x2b4   : > { %v1029_v15 = vsel %vm825_vm2, %v1019_v14, -inf }
 0x2b5   : > { %1030 = vmax.xlane.f32.xlu0 %v1029_v15 }
 0x2be   : > { %807 = vrot.lane.b32.xlu1 %v2495_v41, %s2171_s22  ;;  %s2709_s22 = sld [smem:[#allocation20_spill]] }
 0x2c7   : > { %v1022_v16 = vpop.xlane.xlu0 %1021 }
 0x2c8   : > { %v1032_v17 = vsub.f32 %v1016_v55, %v1022_v16 }
 0x2ca   : > { %v1036_v18 = vmul.f32 1.442695, %v1032_v17 }
 0x2cc   : > { %1988 = vpow2.f32 %v1036_v18 }
 0x2d6   : > { %v1989_v19 = vpop.eup %1988 }
 0x2d7   : > { %v1044_v20 = vsel %vm825_vm2, %v1989_v19, 0.0 }
 0x2e2   : > { %1045 = vadd.xlane.f32.xlu1 %v1044_v20 }
 0x33a   : > { %v1025_v21 = vpop.xlane.xlu1 %1024 }
 0x33b   : > { %v1033_v22 = vsub.f32 %v1017_v62, %v1025_v21 }
 0x33d   : > { %v1038_v23 = vmul.f32 1.442695, %v1033_v22 }
 0x33e   : > { %v1028_v24 = vpop.xlane.xlu0 %1027  ;;  %v808_v25 = vpop.permute.xlu1 %807 }
 0x33f   : > { %1990 = vpow2.f32 %v1038_v23  ;;  %v1034_v26 = vsub.f32 %v1018_v7, %v1028_v24  ;;  %v817_v27 = vpack.c.bf16 %v808_v25, %v808_v25  ;;  %v1719_v24 = vld [vmem:[#allocation5] ss:$0 sm:$0xff] }
 0x341   : > { %v1040_v28 = vmul.f32 1.442695, %v1034_v26  ;;  %v1119_v29 = vsel %vm1071_vm3, %v817_v27, 0 }
 0x342   : > { %1839 = vmatpush3.bf16.msra.mxu0 %v1119_v29  ;;  %v1031_v30 = vpop.xlane.xlu0 %1030 }
 0x343   : > { %1992 = vpow2.f32 %v1040_v28  ;;  %v1035_v31 = vsub.f32 %v1019_v14, %v1031_v30  ;;  %1850 = vmatprep.subr.bf16.mxu0 %v2169_v0 }
 0x345   : > { %v1042_v32 = vmul.f32 1.442695, %v1035_v31 }
 0x347   : > { %1994 = vpow2.f32 %v1042_v32 }
 0x349   : > { %v1991_v33 = vpop.eup %1990 }
 0x34a   : > { %v1047_v34 = vsel %vm825_vm2, %v1991_v33, 0.0 }
 0x34b   : > { %1048 = vadd.xlane.f32.xlu0 %v1047_v34 }
 0x34d   : > { %v1993_v35 = vpop.eup %1992 }
 0x34e   : > { %v1050_v36 = vsel %vm825_vm2, %v1993_v35, 0.0 }
 0x34f   : > { %1051 = vadd.xlane.f32.xlu1 %v1050_v36 }
 0x351   : > { %v1995_v37 = vpop.eup %1994 }
 0x352   : > { %v1053_v38 = vsel %vm825_vm2, %v1995_v37, 0.0 }
 0x353   : > { %1054 = vadd.xlane.f32.xlu0 %v1053_v38  ;;  %v1979_v38 = vld [vmem:[%s2667_s11 + $0x8] sm:$0xff]  }
 0x360   : > { %813 = vrot.lane.b32.xlu1 %v2495_v41, %s2172_s23  ;;  %s2710_s23 = sld [smem:[#allocation21_spill]] }
 0x369   : > { %810 = vrot.lane.b32.xlu0 %v2495_v41, %s2173_s30  ;;  %s1741_s30 = sshll.u32 %s2289_s28, 7  ;;  %s2177_s28 = smov [#allocation8]  }
 0x36f   : > { %v1046_v39 = vpop.xlane.xlu1 %1045 }
 0x370   : > { %1996 = vrcp.f32 %v1046_v39  ;;  %v1981_v39 = vld [vmem:[%s2669_s13 + $0x8] sm:$0xff]  }
 0x37a   : > { %v1997_v40 = vpop.eup %1996 }
 0x37b   : > { %v1060_v42 = vmul.f32 %v1997_v40, %v1989_v19  ;;  %v1982_v40 = vld [vmem:[%s2669_s13 + $0x10] sm:$0xff]  }
 0x37d   : > { %v1064_v43 = vpack.c.bf16 %v1060_v42, %v1060_v42 }
 0x37f   : > { %1835 = vmatmul.mubr.msk.bf16.vlgmr.msra.gmra.mrb[8].mxu1 %vm825_vm2, %v1064_v43 }
 0x380   : > { %1846 = vmatprep.mubr.msk.bf16.mxu1 %vm2170_vm0, %v2169_v0 }
 0x3d8   : > { %v1049_v44 = vpop.xlane.xlu0 %1048 }
 0x3d9   : > { %1998 = vrcp.f32 %v1049_v44 }
 0x3dc   : > { %v1052_v45 = vpop.xlane.xlu1 %1051 }
 0x3dd   : > { %2000 = vrcp.f32 %v1052_v45 }
 0x3e0   : > { %v1055_v46 = vpop.xlane.xlu0 %1054  ;;  %v814_v47 = vpop.permute.xlu1 %813 }
 0x3e1   : > { %2002 = vrcp.f32 %v1055_v46  ;;  %v819_v41 = vpack.c.bf16 %v814_v47, %v814_v47  ;;  %v1723_v46 = vld [vmem:[#allocation7] ss:$0 sm:$0xff] }
 0x3e3   : > { %v1999_v48 = vpop.eup %1998  ;;  %v1211_v56 = vsel %vm1071_vm3, %v819_v41, 0 }
 0x3e4   : > { %v1061_v49 = vmul.f32 %v1999_v48, %v1991_v33  ;;  %v811_v50 = vpop.permute.xlu0 %810  ;;  %v1724_v48 = vld [vmem:[%s2666_s10] ss:$0 sm:$0xff] }
 0x3e5   : > { %v818_v51 = vpack.c.bf16 %v811_v50, %v811_v50 }
 0x3e6   : > { %v1065_v52 = vpack.c.bf16 %v1061_v49, %v1061_v49 }
 0x3e7   : > { %v2001_v53 = vpop.eup %2000  ;;  %v1165_v54 = vsel %vm1071_vm3, %v818_v51, 0  ;;  %v1983_v51 = vld [vmem:[%s2669_s13 + $0x18] sm:$0xff]  }
 0x3e8   : > { %v1062_v55 = vmul.f32 %v2001_v53, %v1993_v35  ;;  %1841 = vmatmul.mubr.msk.bf16.vlgmr.msra.gmra.mrb[20].mxu0 %vm825_vm2, %v1065_v52  ;;  %1845 = vmatpush3.bf16.msra.mxu1 %v1165_v54  ;;  %v1984_v52 = vld [vmem:[%s2669_s13 + $0x20] sm:$0xff]   ;;  %v1985_v53 = vld [vmem:[%s2669_s13 + $0x28] sm:$0xff]   ;;  %v1986_v54 = vld [vmem:[%s2669_s13 + $0x30] sm:$0xff]  }
 0x3e9   : > { %1851 = vmatpush3.bf16.msra.mxu0 %v1211_v56  ;;  %1852 = vmatprep.mubr.msk.bf16.mxu0 %vm2170_vm0, %v2169_v0  ;;  %v1725_v56 = vld [vmem:[%s2668_s12] ss:$0 sm:$0xff] }
 0x3ea   : > { %v1066_v57 = vpack.c.bf16 %v1062_v55, %v1062_v55  ;;  %1856 = vmatprep.subr.bf16.mxu1 %v2169_v0  ;;  %1864 = vmatprep.subr.bf16.mxu0 %v2169_v0  ;;  %v1987_v55 = vld [vmem:[%s2669_s13 + $0x38] sm:$0xff]  }
 0x3eb   : > { %v2003_v58 = vpop.eup %2002 }
 0x3ec   : > { %v1063_v59 = vmul.f32 %v2003_v58, %v1995_v37  ;;  %1847 = vmatmul.mubr.msk.bf16.vlgmr.msra.gmra.mrb[12].mxu1 %vm825_vm2, %v1066_v57  ;;  %v1978_v37 = vld [vmem:[%s2667_s11] sm:$0xff]  }
 0x3ed   : > { %1860 = vmatprep.mubr.msk.bf16.mxu1 %vm2170_vm0, %v2169_v0  ;;  %1857 = vmatpush3.bf16.msra.mxu1 %v1976_v2 }
 0x3ee   : > { %v1067_v60 = vpack.c.bf16 %v1063_v59, %v1063_v59  ;;  %1858 = vmatprep.subr.bf16.mxu1 %v2169_v0 }
 0x3f0   : > { %1853 = vmatmul.mubr.msk.bf16.vlgmr.msra.gmra.mrb[24].mxu0 %vm825_vm2, %v1067_v60 }
 0x3f1   : > { %1868 = vmatprep.mubr.msk.bf16.mxu0 %vm2170_vm0, %v2169_v0  ;;  %1859 = vmatpush3.bf16.msra.mxu1 %v1977_v4 }
 0x3f2   : > { %1872 = vmatprep.subr.bf16.mxu1 %v2169_v0  ;;  %1865 = vmatpush3.bf16.msra.mxu0 %v1978_v37 }
 0x3f3   : > { %1866 = vmatprep.subr.bf16.mxu0 %v2169_v0 }
 0x3f6   : > { %1867 = vmatpush3.bf16.msra.mxu0 %v1979_v38 }
 0x452   : > { %v1109_v61 = vpop.f32.mrb[8].mxu1 }
 0x453   : > { %v1836_v62 = vpop.f32.mrb[9].mxu1 }
 0x454   : > { %v1112_v63 = vpop.f32.mrb[10].mxu1 }
 0x455   : > { %v1837_v1 = vpop.f32.mrb[11].mxu1 }
 0x4bb   : > { %v1155_v5 = vpop.f32.mrb[20].mxu0 }
 0x4bc   : > { %1254 = vrot.lane.b32.xlu1 %v1155_v5, %s2174_s21  ;;  %v1842_v6 = vpop.f32.mrb[21].mxu0  ;;  %v1729_v5 = vld [vmem:[%s2670_s14] ss:$0 sm:$0xff]  ;;  %s2711_s21 = sld [smem:[#allocation22_spill]] }
 0x4bd   : > { %v1158_v7 = vpop.f32.mrb[22].mxu0 }
 0x4be   : > { %v1843_v8 = vpop.f32.mrb[23].mxu0 }
 0x4bf   : > { %v1201_v9 = vpop.f32.mrb[12].mxu1 }
 0x4c0   : > { %1258 = vrot.lane.b32.xlu0 %v1201_v9, %s2175_s18  ;;  %v1848_v10 = vpop.f32.mrb[13].mxu1  ;;  %s575_s18 = sand.u32 1, %s2156_s25  }
 0x4c1   : > { %v1204_v11 = vpop.f32.mrb[14].mxu1  ;;  %s1584_s20 = scalar_lea.sflag [#allocation4], %s575_s18 }
 0x4c2   : > { %v1849_v12 = vpop.f32.mrb[15].mxu1  ;;  %s2613_s0 = scalar_lea.hbm %s2711_s21, %s1741_s30 }
 0x4c3   : > { %v1247_v13 = vpop.f32.mrb[24].mxu0 }
 0x4c4   : > { %1262 = vrot.lane.b32.xlu1 %v1247_v13, %s2176_s29  ;;  %v1854_v14 = vpop.f32.mrb[25].mxu0  ;;  %s1697_s29 = sshll.u32 %s575_s18, 3 }
 0x4c5   : > { %v1250_v15 = vpop.f32.mrb[26].mxu0  ;;  %s577_s15 = scalar_lea.vmem [#allocation8], %s1697_s29  ;;  %s2098_s29 = sshll.u32 %s2177_s28, 4  ;;  %s2099_s29 = int_to_ptr.vmem [resolvable:$false] %s2098_s29 }
 0x4c6   : > { %v1855_v16 = vpop.f32.mrb[27].mxu0  ;;  %s1597_s16 = sshll.u32 %s577_s15, 4  ;;  %s2615_s16 = int_to_ptr.vmem [resolvable:$true] %s1597_s16 }
 0x4c7   : > { %s2094_s17 = scalar_lea.vmem %s2615_s16, 128  ;;  %p2101_p4 = scmp.lt.s32.totalorder %s2615_s16, %s2099_s29 }
 0x4c8   : > { %p2095_p12 = scmp.ne.s32.totalorder %s2615_s16, %s2094_s17 }
 0x4ca   : > { %p2096_p2 = pnand %p2095_p12, %p2712_p10 }
 0x4cc   : > { %p2097_p3 = pneg %p2096_p2 }
 0x52e   : > { %v1255_v17 = vpop.permute.xlu1 %1254 }
 0x52f   : > { %v1265_v19 = vsel %vm825_vm2, %v1109_v61, %v1255_v17 }
 0x532   : > { %v1259_v18 = vpop.permute.xlu0 %1258 }
 0x533   : > { %v1267_v20 = vsel %vm1266_vm5, %v1265_v19, %v1259_v18 }
 0x536   : > { %v1263_v21 = vpop.permute.xlu1 %1262 }
 0x537   : > { %v1269_v22 = vsel %vm1268_vm6, %v1267_v20, %v1263_v21 }
 0x538   : > { %v1270_v23 = vpack.c.bf16 %v1269_v22, %v1269_v22  ;;  %v1738_v22 = vld [vmem:[%s2709_s22] ss:$0 sm:$0xff]  ;;  %s2100_s22 = scalar_lea.vmem %s2099_s29, 256 }
 0x539   : > { %p2102_p7 = scmp.lt.s32.totalorder %s2100_s22, %s2094_s17 }
 0x53a   : > { %1861 = vmatmul.mubr.msk.bf16.vlgmr.msra.gmra.mrb[16].mxu1 %vm608_vm1, %v1270_v23 }
 0x53b   : > { %1888 = vmatprep.mubr.msk.bf16.mxu1 %vm2170_vm0, %v2169_v0  ;;  %p2103_p8 = por %p2102_p7, %p2101_p4 }
 0x53d   : > { %p2104_p11 = pnand %p2103_p8, %p2097_p3 }
 0x60d   : > { %v1331_v25 = vpop.f32.mrb[16].mxu1 }
 0x60e   : > { %v1332_v26 = vadd.f32 %v1719_v24, %v1331_v25  ;;  %v1862_v27 = vpop.f32.mrb[17].mxu1  ;;  %v1739_v24 = vld [vmem:[%s2710_s23] ss:$0 sm:$0xff] }
 0x60f   : > { %v1334_v28 = vpop.f32.mrb[18].mxu1 }
 0x610   : > { %v1863_v29 = vpop.f32.mrb[19].mxu1  ;;  %v1337_v30 = vadd.f32 %v1332_v26, %v2432_v3  ;;  %v1980_v3 = vld [vmem:[%s2669_s13] sm:$0xff]  }
 0x611   : > { %1873 = vmatpush3.bf16.msra.mxu1 %v1980_v3 }
 0x612   : > { %v1340_v31 = vsel %vm608_vm1, %v1337_v30, 0.0  ;;  %1874 = vmatprep.subr.bf16.mxu1 %v2169_v0 }
 0x613   : > { %1341 = vadd.xlane.f32.xlu0 %v1340_v31 }
 0x615   : > { %1875 = vmatpush3.bf16.msra.mxu1 %v1981_v39 }
 0x616   : > { %1876 = vmatprep.subr.bf16.mxu1 %v2169_v0 }
 0x619   : > { %1877 = vmatpush3.bf16.msra.mxu1 %v1982_v40 }
 0x61a   : > { %1878 = vmatprep.subr.bf16.mxu1 %v2169_v0 }
 0x61d   : > { %1879 = vmatpush3.bf16.msra.mxu1 %v1983_v51 }
 0x61e   : > { %1880 = vmatprep.subr.bf16.mxu1 %v2169_v0 }
 0x621   : > { %1881 = vmatpush3.bf16.msra.mxu1 %v1984_v52 }
 0x622   : > { %1882 = vmatprep.subr.bf16.mxu1 %v2169_v0 }
 0x625   : > { %1883 = vmatpush3.bf16.msra.mxu1 %v1985_v53 }
 0x626   : > { %1884 = vmatprep.subr.bf16.mxu1 %v2169_v0 }
 0x629   : > { %1885 = vmatpush3.bf16.msra.mxu1 %v1986_v54 }
 0x62a   : > { %1886 = vmatprep.subr.bf16.mxu1 %v2169_v0 }
 0x62d   : > { %1887 = vmatpush3.bf16.msra.mxu1 %v1987_v55 }
 0x6a0   : > { %v1342_v32 = vpop.xlane.xlu0 %1341 }
 0x6a1   : > { %v1344_v33 = vmul.f32 0.03125, %v1342_v32 }
 0x6a3   : > { %v1345_v34 = vsub.f32 %v1337_v30, %v1344_v33 }
 0x6a5   : > { %v1346_v35 = vmul.f32 %v1345_v34, %v1345_v34 }
 0x6a7   : > { %v1347_v36 = vsel %vm608_vm1, %v1346_v35, 0.0 }
 0x6a8   : > { %1348 = vadd.xlane.f32.xlu1 %v1347_v36 }
 0x735   : > { %v1349_v42 = vpop.xlane.xlu1 %1348 }
 0x736   : > { %v1350_v43 = vmul.f32 0.03125, %v1349_v42 }
 0x738   : > { %v1351_v44 = vadd.f32 1e-05, %v1350_v43 }
 0x73a   : > { %2004 = vrsqrt.f32 %v1351_v44 }
 0x744   : > { %v2005_v45 = vpop.eup %2004 }
 0x745   : > { %v1353_v47 = vmul.f32 %v2005_v45, %v1345_v34 }
 0x747   : > { %v1360_v49 = vmul.f32 %v1723_v46, %v1353_v47 }
 0x749   : > { %v1367_v41 = vadd.f32 %v1724_v48, %v1360_v49 }
 0x74b   : > { %v1368_v50 = vpack.c.bf16 %v1367_v41, %v1367_v41 }
 0x74d   : > { %1869 = vmatmul.mubr.msk.bf16.vlgmr.msra.gmra.mrb[28].mxu0 %vm608_vm1, %v1368_v50 }
 0x820   : > { %v1429_v57 = vpop.f32.mrb[28].mxu0 }
 0x821   : > { %v1430_v58 = vadd.f32 %v1725_v56, %v1429_v57  ;;  %v1870_v59 = vpop.f32.mrb[29].mxu0 }
 0x822   : > { %v1432_v60 = vpop.f32.mrb[30].mxu0 }
 0x823   : > { %v1436_v61 = vmul.f32 0.70710677, %v1430_v58  ;;  %v1871_v62 = vpop.f32.mrb[31].mxu0  ;;  %v1435_v1 = vmul.f32 0.5, %v1430_v58 }
 0x825   : > { %2006 = verf.f32 %v1436_v61 }
 0x82f   : > { %v2007_v63 = vpop.eup %2006 }
 0x830   : > { %v1438_v2 = vadd.f32 1.0, %v2007_v63 }
 0x832   : > { %v1439_v0 = vmul.f32 %v1438_v2, %v1435_v1 }
 0x834   : > { %v1440_v4 = vpack.c.bf16 %v1439_v0, %v1439_v0 }
 0x836   : > { %1889 = vmatmul.mubr.bf16.vlgmr.msra.gmra.mrb[20].mxu1 %v1440_v4 }
 0x909   : > { %v1546_v6 = vpop.f32.mrb[20].mxu1 }
 0x90a   : > { %v1547_v7 = vadd.f32 %v1729_v5, %v1546_v6  ;;  %v1890_v8 = vpop.f32.mrb[21].mxu1 }
 0x90b   : > { %v1549_v9 = vpop.f32.mrb[22].mxu1 }
 0x90c   : > { %v1891_v10 = vpop.f32.mrb[23].mxu1  ;;  %v1552_v11 = vadd.f32 %v1547_v7, %v1367_v41 }
 0x90e   : > { %v1555_v12 = vsel %vm608_vm1, %v1552_v11, 0.0 }
 0x90f   : > { %1556 = vadd.xlane.f32.xlu0 %v1555_v12 }
 0x99c   : > { %v1557_v13 = vpop.xlane.xlu0 %1556 }
 0x99d   : > { %v1558_v14 = vmul.f32 0.03125, %v1557_v13 }
 0x99f   : > { %v1559_v15 = vsub.f32 %v1552_v11, %v1558_v14 }
 0x9a1   : > { %v1560_v16 = vmul.f32 %v1559_v15, %v1559_v15 }
 0x9a3   : > { %v1561_v17 = vsel %vm608_vm1, %v1560_v16, 0.0 }
 0x9a4   : > { %1562 = vadd.xlane.f32.xlu0 %v1561_v17 }
 0xa31   : > { %v1563_v18 = vpop.xlane.xlu0 %1562 }
 0xa32   : > { %v1564_v19 = vmul.f32 0.03125, %v1563_v18 }
 0xa34   : > { %v1565_v20 = vadd.f32 1e-05, %v1564_v19 }
 0xa36   : > { %2008 = vrsqrt.f32 %v1565_v20 }
 0xa40   : > { %v2009_v21 = vpop.eup %2008 }
 0xa41   : > { %v1567_v23 = vmul.f32 %v2009_v21, %v1559_v15 }
 0xa43   : > { %v1574_v25 = vmul.f32 %v1738_v22, %v1567_v23 }
 0xa45   : > { %v1581_v26 = vadd.f32 %v1739_v24, %v1574_v25 }
 0xa47   : > { %1582 = vst.msk [vmem:[%s577_s15] sm:$0xff] %vm608_vm1, %v1581_v26 }
 0xa48   : > { %2107 = shalt.err (!%p2104_p11)
}
 0xa49   : > { %s2108_s18 = scalar_lea.hbm %s2613_s0, 128  ;;  %s2112_s23 = scalar_lea.hbm %s2711_s21, 256 }
 0xa4a   : > { %p2109_p13 = scmp.ne.s32.totalorder %s2613_s0, %s2108_s18  ;;  %p2113_p6 = scmp.lt.u32.totalorder %s2613_s0, %s2711_s21 }
 0xa4b   : > { %p2114_p5 = scmp.lt.u32.totalorder %s2112_s23, %s2108_s18  ;;  %p2116_p12 = scmp.lt.u32.totalorder %s2108_s18, %s2613_s0 }
 0xa4c   : > { %p2110_p0 = pnand %p2109_p13, %p2712_p10 }
 0xa4d   : > { %p2115_p9 = por %p2114_p5, %p2113_p6 }
 0xa4e   : > { %p2111_p1 = pneg %p2110_p0 }
 0xa4f   : > { %p2117_p2 = por %p2116_p12, %p2115_p9 }
 0xa51   : > { %p2118_p3 = pnand %p2117_p2, %p2111_p1 }
 0xa53   : > { %2121 = shalt.err (!%p2118_p3)
}
 0xa54   : > { %1904 = dma.vmem_to_hbm [thread:$0]  (%p2712_p10), %s2615_s16, 128, %s2613_s0, %s1584_s20  }
 0xa55 PF: > { %s2713_s27 = sld [smem:[#allocation14_spill]]  ;;  %s2714_s26 = sld [smem:[#allocation12_spill]] }
 0xa56   : > { %s2715_s17 = sld [smem:[#allocation17_spill]] }
 0xa5b   : > { %p1926_p4 = scmp.ge.s32.totalorder %s2713_s27, 2  ;;  %s1609_s28 = sand.u32 1, %s2714_s26  }
 0xa5c   : > { %p2716_p7 = scmp.ne.s32.totalorder %s2715_s17, 0  ;;  %s1610_s29 = scalar_lea.sflag [#allocation4], %s1609_s28 }
 0xa5e   : > { %p1917_p8 = pnand %p1926_p4, %p2716_p7 }
 0xa60   : > { %2147 = dma.done.wait (!%p1917_p8), %s1610_s29, 128  }
 0xa61   : > { %2149 = vsyncadd (!%p1917_p8), %s1610_s29, 4294967168  ;;  %s2717_s27 = sld [smem:[#allocation15_spill]]  ;;  %s2718_s22 = sld [smem:[#allocation13_spill]] }
 0xa62   : > { %s2719_s26 = sld [smem:[#allocation16_spill]]  ;;  %s2720_s24 = smov %s2156_s25 }
 0xa67   : > { %p29_p11 = scmp.ge.s32.totalorder %s2717_s27, 4   ;;  %s2721_s25 = smov %s2718_s22 }
 0xa69   :  { %31 = sbr.rel (!%p29_p11) target bundleno = 11 (0xb), region = 136 }
 0xa70   :  { %1615 = vsyncpa [#allocation3], 1 }
 0xa71   :  { %1617 = vsyncpa [#allocation3 + $0x1], 1 }
 0xa72   :  { %1618 = vsyncpa [#allocation6], 1 }
 0xa73   :  { %1619 = vsyncpa [#allocation4], 1 }
 0xa74   :  { %1621 = vsyncpa [#allocation4 + $0x1], 1 }

</bundles_post_ra>
